<compile_context>
chip_gen: v6e
topology: v6e:2x2x1
jax: 0.10.0
libtpu: 0.0.40
codegen_flags: <defaults>
</compile_context>

<pallas_src>
import math
import jax
import jax.numpy as jnp
from jax.experimental import pallas as pl
from jax.experimental.pallas import tpu as pltpu

# ---- model dims (module defaults: hidden_size=128, num_heads=8) ----
CLASSIFIER_SIZE = 32
HIDDEN = 128
NUM_HEADS = 8
HEAD_DIM = HIDDEN // NUM_HEADS
NUM_CLASS = 10
OUT_PAD = 128          # lane-dense padded output width
BATCH = 8              # small test batch


def _round_up(n, m):
    return ((n + m - 1) // m) * m


def mha_mlp_kernel(x_ref, w1_ref, b1_ref, wf_ref, bf_ref,
                   wm2_ref, bm2_ref, wm3_ref, bm3_ref, out_ref):
    # linear1 + ReLU (bf16 operands, f32 accumulate, f32 elementwise)
    h = jnp.dot(x_ref[...], w1_ref[...],
                preferred_element_type=jnp.float32) + b1_ref[...]
    h = jnp.maximum(h, 0.0)                                        # (TB, H) f32

    # Fused [seq_len=1 attention (softmax==1) + first MLP linear] + ReLU:
    #   m1 = relu(((h @ Wv + bv) @ Wo + bo) @ Wm1 + bm1) == relu(h @ w_f + b_f)
    m1 = jnp.maximum(
        jnp.dot(h.astype(jnp.bfloat16), wf_ref[...],
                preferred_element_type=jnp.float32) + bf_ref[...], 0.0)

    # mlp tail: Linear -> ReLU -> Linear (final layer lane-padded to 128)
    m2 = jnp.maximum(
        jnp.dot(m1.astype(jnp.bfloat16), wm2_ref[...],
                preferred_element_type=jnp.float32) + bm2_ref[...], 0.0)
    out = jnp.dot(m2.astype(jnp.bfloat16), wm3_ref[...],
                  preferred_element_type=jnp.float32) + bm3_ref[...]
    out_ref[...] = out.astype(out_ref.dtype)                       # bf16 lane-dense store


def prepare_kernel_params(params):
    """Fold seq_len==1 attention AND the first MLP linear into one matmul, pad the
    final layer to a lane-dense 128-wide output, cast matmul operands to bf16
    (biases stay f32)."""
    (w1, b1, wq, bq, wk, bk, wv, bv, wo, bo,
     wm1, bm1, wm2, bm2, wm3, bm3) = params
    del wq, bq, wk, bk  # dead math for seq_len == 1 (attention weights are exactly 1)
    wa = wv @ wo                       # fused value/output projection
    ba = bv @ wo + bo
    w_f = wa @ wm1                     # fuse with first MLP linear (no nonlinearity between)
    b_f = ba @ wm1 + bm1
    wm3_p = jnp.zeros((HIDDEN, OUT_PAD), jnp.float32).at[:, :NUM_CLASS].set(wm3)
    bm3_p = jnp.zeros((1, OUT_PAD), jnp.float32).at[:, :NUM_CLASS].set(bm3)
    bf = lambda a: a.astype(jnp.bfloat16)
    return (bf(w1), b1, bf(w_f), b_f, bf(wm2), bm2, bf(wm3_p), bm3_p)


def _choose_tile(B, tile_b):
    """Pick a batch tile: single 16-aligned tile for tiny batches; otherwise aim for
    >= 2 balanced grid steps (v7x megacore) with 256-aligned tiles for large batches."""
    if B <= 32:
        return _round_up(B, 16)
    align = 256 if B > 512 else 16
    half = _round_up(pl.cdiv(B, 2), align)
    return min(tile_b, half)


def mha_mlp_classifier(x, kernel_params, tile_b=2048):
    B = x.shape[0]
    tb = _choose_tile(B, tile_b)
    b_pad = _round_up(B, tb)
    if b_pad != B:
        x = jnp.pad(x, ((0, b_pad - B), (0, 0)))
    x = x.astype(jnp.bfloat16)

    def resident(a):  # weights/biases: same block every grid step -> stay VMEM-resident
        return pl.BlockSpec(a.shape, lambda i: (0, 0))

    grid = (b_pad // tb,)

    # Advisory cost for XLA's scheduler: 4 matmuls per row, bf16 in/out streams.
    flops = 2 * b_pad * (CLASSIFIER_SIZE * HIDDEN + 3 * HIDDEN * HIDDEN)
    bytes_accessed = (b_pad * CLASSIFIER_SIZE * 2        # x (bf16)
                      + b_pad * OUT_PAD * 2              # out (bf16)
                      + sum(a.size * a.dtype.itemsize for a in kernel_params))
    cost = pl.CostEstimate(flops=flops, transcendentals=0,
                           bytes_accessed=bytes_accessed)

    out = pl.pallas_call(
        mha_mlp_kernel,
        out_shape=jax.ShapeDtypeStruct((b_pad, OUT_PAD), jnp.bfloat16),
        grid_spec=pltpu.PrefetchScalarGridSpec(
            num_scalar_prefetch=0,
            grid=grid,
            in_specs=[pl.BlockSpec((tb, CLASSIFIER_SIZE), lambda i: (i, 0))]
                     + [resident(a) for a in kernel_params],
            out_specs=pl.BlockSpec((tb, OUT_PAD), lambda i: (i, 0)),
        ),
        compiler_params=pltpu.CompilerParams(
            dimension_semantics=("parallel",),
            vmem_limit_bytes=32 * 1024 * 1024,
        ),
        cost_estimate=cost,
    )(x, *kernel_params)
    return out[:B, :NUM_CLASS].astype(jnp.float32)


def init_params(key):
    """Deterministic synthetic params; weights stored as (in, out) = W_pytorch.T."""
    ks = jax.random.split(key, 16)

    def lin(kw, kb, fin, fout):
        bound = 1.0 / math.sqrt(fin)
        w = jax.random.uniform(kw, (fin, fout), jnp.float32, -bound, bound)
        b = jax.random.uniform(kb, (1, fout), jnp.float32, -bound, bound)
        return w, b

    w1, b1 = lin(ks[0], ks[1], CLASSIFIER_SIZE, HIDDEN)
    wq, bq = lin(ks[2], ks[3], HIDDEN, HIDDEN)
    wk, bk = lin(ks[4], ks[5], HIDDEN, HIDDEN)
    wv, bv = lin(ks[6], ks[7], HIDDEN, HIDDEN)
    wo, bo = lin(ks[8], ks[9], HIDDEN, HIDDEN)
    wm1, bm1 = lin(ks[10], ks[11], HIDDEN, HIDDEN)
    wm2, bm2 = lin(ks[12], ks[13], HIDDEN, HIDDEN)
    wm3, bm3 = lin(ks[14], ks[15], HIDDEN, NUM_CLASS)
    return (w1, b1, wq, bq, wk, bk, wv, bv, wo, bo,
            wm1, bm1, wm2, bm2, wm3, bm3)


def reference_f32(x, params):
    """Pure-JAX f32 reference mirroring the full PyTorch forward (incl. q/k/softmax)."""
    (w1, b1, wq, bq, wk, bk, wv, bv, wo, bo,
     wm1, bm1, wm2, bm2, wm3, bm3) = params
    h = jnp.maximum(x @ w1 + b1, 0.0)
    q = (h @ wq + bq).reshape(-1, NUM_HEADS, HEAD_DIM)
    k = (h @ wk + bk).reshape(-1, NUM_HEADS, HEAD_DIM)
    v = (h @ wv + bv).reshape(-1, NUM_HEADS, HEAD_DIM)
    scores = jnp.sum(q * k, axis=-1, keepdims=True) / math.sqrt(HEAD_DIM)
    attn_w = jax.nn.softmax(scores, axis=-1)          # length-1 key axis -> ones
    ctx = (attn_w * v).reshape(-1, HIDDEN)
    attn = ctx @ wo + bo
    m1 = jnp.maximum(attn @ wm1 + bm1, 0.0)
    m2 = jnp.maximum(m1 @ wm2 + bm2, 0.0)
    return m2 @ wm3 + bm3


def reference_kernel_math(x, kp):
    """Reference mirroring the kernel's exact arithmetic (fused weights, bf16 operands,
    f32 accumulate, bf16 final store)."""
    (w1, b1, w_f, b_f, wm2, bm2, wm3, bm3) = kp
    d = lambda a, w: jnp.dot(a.astype(jnp.bfloat16), w,
                             preferred_element_type=jnp.float32)
    h = jnp.maximum(d(x, w1) + b1, 0.0)
    m1 = jnp.maximum(d(h, w_f) + b_f, 0.0)
    m2 = jnp.maximum(d(m1, wm2) + bm2, 0.0)
    out = (d(m2, wm3) + bm3).astype(jnp.bfloat16).astype(jnp.float32)
    return out[:, :NUM_CLASS]


if __name__ == "__main__":
    key = jax.random.PRNGKey(0)
    kx, kp = jax.random.split(key)
    x = jax.random.normal(kx, (BATCH, CLASSIFIER_SIZE), jnp.float32)
    params = init_params(kp)
    kparams = prepare_kernel_params(params)

    out = mha_mlp_classifier(x, kparams)
    out = jax.block_until_ready(out)
    assert out.shape == (BATCH, NUM_CLASS)

    ref_bits = reference_kernel_math(x, kparams)   # same fused/bf16 math as the kernel
    ref_full = reference_f32(x, params)            # full-precision full-attention math
    assert jnp.allclose(out, ref_bits, atol=1e-2, rtol=1e-2), "mismatch vs kernel-math reference"
    assert jnp.allclose(out, ref_full, atol=5e-2, rtol=5e-2), "mismatch vs f32 reference"
    print("KERNEL_OK")
</pallas_src>

<mosaic_0001>
module attributes {stable_mosaic.version = 11 : i64} {
  func.func @mha_mlp_kernel(%arg0: i32, %arg1: memref<16x32xbf16, #tpu.memory_space<vmem>>, %arg2: memref<32x128xbf16, #tpu.memory_space<vmem>>, %arg3: memref<1x128xf32, #tpu.memory_space<vmem>>, %arg4: memref<128x128xbf16, #tpu.memory_space<vmem>>, %arg5: memref<1x128xf32, #tpu.memory_space<vmem>>, %arg6: memref<128x128xbf16, #tpu.memory_space<vmem>>, %arg7: memref<1x128xf32, #tpu.memory_space<vmem>>, %arg8: memref<128x128xbf16, #tpu.memory_space<vmem>>, %arg9: memref<1x128xf32, #tpu.memory_space<vmem>>, %arg10: memref<16x128xbf16, #tpu.memory_space<vmem>>) attributes {dimension_semantics = [#tpu.dimension_semantics<parallel>], iteration_bounds = array<i64: 1>, scalar_prefetch = 0 : i64, scratch_operands = 0 : i64, tpu.core_type = #tpu.core_type<tc>, window_params = [{transform_indices = @transform_0, window_bounds = array<i64: 16, 32>}, {pipeline_mode = #tpu.pipeline_mode<synchronous>, transform_indices = @transform_1, window_bounds = array<i64: 32, 128>}, {pipeline_mode = #tpu.pipeline_mode<synchronous>, transform_indices = @transform_2, window_bounds = array<i64: 1, 128>}, {pipeline_mode = #tpu.pipeline_mode<synchronous>, transform_indices = @transform_3, window_bounds = array<i64: 128, 128>}, {pipeline_mode = #tpu.pipeline_mode<synchronous>, transform_indices = @transform_4, window_bounds = array<i64: 1, 128>}, {pipeline_mode = #tpu.pipeline_mode<synchronous>, transform_indices = @transform_5, window_bounds = array<i64: 128, 128>}, {pipeline_mode = #tpu.pipeline_mode<synchronous>, transform_indices = @transform_6, window_bounds = array<i64: 1, 128>}, {pipeline_mode = #tpu.pipeline_mode<synchronous>, transform_indices = @transform_7, window_bounds = array<i64: 128, 128>}, {pipeline_mode = #tpu.pipeline_mode<synchronous>, transform_indices = @transform_8, window_bounds = array<i64: 1, 128>}, {transform_indices = @transform_9, window_bounds = array<i64: 16, 128>}]} {
    %c0 = arith.constant 0 : index
    %c0_0 = arith.constant 0 : index
    %0 = vector.load %arg1[%c0, %c0_0] : memref<16x32xbf16, #tpu.memory_space<vmem>>, vector<16x32xbf16>
    %c0_1 = arith.constant 0 : index
    %c0_2 = arith.constant 0 : index
    %1 = vector.load %arg2[%c0_1, %c0_2] : memref<32x128xbf16, #tpu.memory_space<vmem>>, vector<32x128xbf16>
    %cst = arith.constant dense<0.000000e+00> : vector<16x128xf32>
    %2 = tpu.matmul %0, %1, %cst {dimension_numbers = #tpu.dot_dimension_numbers<[1], [0], [0], [1], [0, 0, 1, 1], [], []>} : vector<16x32xbf16>, vector<32x128xbf16>, vector<16x128xf32> -> vector<16x128xf32>
    %c0_3 = arith.constant 0 : index
    %c0_4 = arith.constant 0 : index
    %3 = vector.load %arg3[%c0_3, %c0_4] : memref<1x128xf32, #tpu.memory_space<vmem>>, vector<1x128xf32>
    %4 = vector.broadcast %3 : vector<1x128xf32> to vector<16x128xf32>
    %5 = arith.addf %2, %4 : vector<16x128xf32>
    %cst_5 = arith.constant 0.000000e+00 : f32
    %6 = vector.broadcast %cst_5 : f32 to vector<16x128xf32>
    %7 = arith.maximumf %5, %6 : vector<16x128xf32>
    %8 = arith.truncf %7 : vector<16x128xf32> to vector<16x128xbf16>
    %c0_6 = arith.constant 0 : index
    %c0_7 = arith.constant 0 : index
    %9 = vector.load %arg4[%c0_6, %c0_7] : memref<128x128xbf16, #tpu.memory_space<vmem>>, vector<128x128xbf16>
    %cst_8 = arith.constant dense<0.000000e+00> : vector<16x128xf32>
    %10 = tpu.matmul %8, %9, %cst_8 {dimension_numbers = #tpu.dot_dimension_numbers<[1], [0], [0], [1], [0, 0, 1, 1], [], []>} : vector<16x128xbf16>, vector<128x128xbf16>, vector<16x128xf32> -> vector<16x128xf32>
    %c0_9 = arith.constant 0 : index
    %c0_10 = arith.constant 0 : index
    %11 = vector.load %arg5[%c0_9, %c0_10] : memref<1x128xf32, #tpu.memory_space<vmem>>, vector<1x128xf32>
    %12 = vector.broadcast %11 : vector<1x128xf32> to vector<16x128xf32>
    %13 = arith.addf %10, %12 : vector<16x128xf32>
    %cst_11 = arith.constant 0.000000e+00 : f32
    %14 = vector.broadcast %cst_11 : f32 to vector<16x128xf32>
    %15 = arith.maximumf %13, %14 : vector<16x128xf32>
    %16 = arith.truncf %15 : vector<16x128xf32> to vector<16x128xbf16>
    %c0_12 = arith.constant 0 : index
    %c0_13 = arith.constant 0 : index
    %17 = vector.load %arg6[%c0_12, %c0_13] : memref<128x128xbf16, #tpu.memory_space<vmem>>, vector<128x128xbf16>
    %cst_14 = arith.constant dense<0.000000e+00> : vector<16x128xf32>
    %18 = tpu.matmul %16, %17, %cst_14 {dimension_numbers = #tpu.dot_dimension_numbers<[1], [0], [0], [1], [0, 0, 1, 1], [], []>} : vector<16x128xbf16>, vector<128x128xbf16>, vector<16x128xf32> -> vector<16x128xf32>
    %c0_15 = arith.constant 0 : index
    %c0_16 = arith.constant 0 : index
    %19 = vector.load %arg7[%c0_15, %c0_16] : memref<1x128xf32, #tpu.memory_space<vmem>>, vector<1x128xf32>
    %20 = vector.broadcast %19 : vector<1x128xf32> to vector<16x128xf32>
    %21 = arith.addf %18, %20 : vector<16x128xf32>
    %cst_17 = arith.constant 0.000000e+00 : f32
    %22 = vector.broadcast %cst_17 : f32 to vector<16x128xf32>
    %23 = arith.maximumf %21, %22 : vector<16x128xf32>
    %24 = arith.truncf %23 : vector<16x128xf32> to vector<16x128xbf16>
    %c0_18 = arith.constant 0 : index
    %c0_19 = arith.constant 0 : index
    %25 = vector.load %arg8[%c0_18, %c0_19] : memref<128x128xbf16, #tpu.memory_space<vmem>>, vector<128x128xbf16>
    %cst_20 = arith.constant dense<0.000000e+00> : vector<16x128xf32>
    %26 = tpu.matmul %24, %25, %cst_20 {dimension_numbers = #tpu.dot_dimension_numbers<[1], [0], [0], [1], [0, 0, 1, 1], [], []>} : vector<16x128xbf16>, vector<128x128xbf16>, vector<16x128xf32> -> vector<16x128xf32>
    %c0_21 = arith.constant 0 : index
    %c0_22 = arith.constant 0 : index
    %27 = vector.load %arg9[%c0_21, %c0_22] : memref<1x128xf32, #tpu.memory_space<vmem>>, vector<1x128xf32>
    %28 = vector.broadcast %27 : vector<1x128xf32> to vector<16x128xf32>
    %29 = arith.addf %26, %28 : vector<16x128xf32>
    %30 = arith.truncf %29 : vector<16x128xf32> to vector<16x128xbf16>
    %c0_23 = arith.constant 0 : index
    %c0_24 = arith.constant 0 : index
    %31 = vector.load %arg10[%c0_23, %c0_24] : memref<16x128xbf16, #tpu.memory_space<vmem>>, vector<16x128xbf16>
    tpu.vector_store %arg10[%c0_23, %c0_24], %30 {strides = array<i32>} : memref<16x128xbf16, #tpu.memory_space<vmem>>, vector<16x128xbf16>,
    return
  }
  func.func @transform_0(%arg0: i32) -> (i32, i32) {
    %c0_i32 = arith.constant 0 : i32
    %c0_i32_0 = arith.constant 0 : i32
    return %arg0, %c0_i32 : i32, i32
  }
  func.func @transform_1(%arg0: i32) -> (i32, i32) {
    %c0_i32 = arith.constant 0 : i32
    %c0_i32_0 = arith.constant 0 : i32
    %c0_i32_1 = arith.constant 0 : i32
    return %c0_i32, %c0_i32_0 : i32, i32
  }
  func.func @transform_2(%arg0: i32) -> (i32, i32) {
    %c0_i32 = arith.constant 0 : i32
    %c0_i32_0 = arith.constant 0 : i32
    %c0_i32_1 = arith.constant 0 : i32
    return %c0_i32, %c0_i32_0 : i32, i32
  }
  func.func @transform_3(%arg0: i32) -> (i32, i32) {
    %c0_i32 = arith.constant 0 : i32
    %c0_i32_0 = arith.constant 0 : i32
    %c0_i32_1 = arith.constant 0 : i32
    return %c0_i32, %c0_i32_0 : i32, i32
  }
  func.func @transform_4(%arg0: i32) -> (i32, i32) {
    %c0_i32 = arith.constant 0 : i32
    %c0_i32_0 = arith.constant 0 : i32
    %c0_i32_1 = arith.constant 0 : i32
    return %c0_i32, %c0_i32_0 : i32, i32
  }
  func.func @transform_5(%arg0: i32) -> (i32, i32) {
    %c0_i32 = arith.constant 0 : i32
    %c0_i32_0 = arith.constant 0 : i32
    %c0_i32_1 = arith.constant 0 : i32
    return %c0_i32, %c0_i32_0 : i32, i32
  }
  func.func @transform_6(%arg0: i32) -> (i32, i32) {
    %c0_i32 = arith.constant 0 : i32
    %c0_i32_0 = arith.constant 0 : i32
    %c0_i32_1 = arith.constant 0 : i32
    return %c0_i32, %c0_i32_0 : i32, i32
  }
  func.func @transform_7(%arg0: i32) -> (i32, i32) {
    %c0_i32 = arith.constant 0 : i32
    %c0_i32_0 = arith.constant 0 : i32
    %c0_i32_1 = arith.constant 0 : i32
    return %c0_i32, %c0_i32_0 : i32, i32
  }
  func.func @transform_8(%arg0: i32) -> (i32, i32) {
    %c0_i32 = arith.constant 0 : i32
    %c0_i32_0 = arith.constant 0 : i32
    %c0_i32_1 = arith.constant 0 : i32
    return %c0_i32, %c0_i32_0 : i32, i32
  }
  func.func @transform_9(%arg0: i32) -> (i32, i32) {
    %c0_i32 = arith.constant 0 : i32
    %c0_i32_0 = arith.constant 0 : i32
    return %arg0, %c0_i32 : i32, i32
  }
}

</mosaic_0001>

<bundles_post_ra>
// kernel: tpu_custom_call.1
= control target key start
LH: loop header
LB: loop body
LE: loop exit
PB: predicated region body
PF: predicated region fallthrough
CT: control target
= control target key end

     0   :  { %14 = vsyncpa [#allocation3], 0  ;;  %s997_s0 = inlined_call_operand.hbm [shape: bf16[16,32], index: 0, kind: input, shape index: {}]   ;;  %s998_s1 = inlined_call_operand.hbm [shape: bf16[32,128], index: 1, kind: input, shape index: {}]   ;;  %s999_s2 = inlined_call_operand.vmem [shape: f32[1,128], index: 2, kind: input, shape index: {}]   ;;  %s1000_s3 = inlined_call_operand.hbm [shape: bf16[128,128], index: 3, kind: input, shape index: {}]   ;;  %s1001_s4 = inlined_call_operand.vmem [shape: f32[1,128], index: 4, kind: input, shape index: {}]   ;;  %s1002_s5 = inlined_call_operand.hbm [shape: bf16[128,128], index: 5, kind: input, shape index: {}]   ;;  %s1003_s6 = inlined_call_operand.vmem [shape: f32[1,128], index: 6, kind: input, shape index: {}]   ;;  %s1004_s7 = inlined_call_operand.hbm [shape: bf16[128,128], index: 7, kind: input, shape index: {}]   ;;  %s1005_s8 = inlined_call_operand.vmem [shape: f32[1,128], index: 8, kind: input, shape index: {}]   ;;  %s1006_s9 = inlined_call_operand.hbm [shape: bf16[16,128], index: 9, kind: output, shape index: {}]  }
   0x1   :  { %15 = vsyncpa [#allocation6], 0 }
   0x2   :  { %16 = vsyncpa [#allocation9], 0 }
   0x3   :  { %17 = vsyncpa [#allocation4], 0  ;;  %s855_s30 = smov [#allocation5]   ;;  %s856_s11 = smov [#allocation8]  }
   0x4   :  { %s35_s10 = sshll.u32 %s855_s30, 4  ;;  %s63_s12 = sshll.u32 %s856_s11, 4  ;;  %s36_s10 = int_to_ptr.vmem [resolvable:$true] %s35_s10  ;;  %s64_s12 = int_to_ptr.vmem [resolvable:$true] %s63_s12 }
   0x5   :  { %s735_s13 = scalar_lea.vmem %s36_s10, 256  ;;  %p740_p1 = scmp.lt.s32.totalorder %s36_s10, %s36_s10 }
   0x6   :  { %p736_p0 = scmp.ne.s32.totalorder %s36_s10, %s735_s13  ;;  %p741_p2 = scmp.lt.s32.totalorder %s735_s13, %s735_s13 }
   0x8   :  { %p742_p3 = por %p741_p2, %p740_p1 }
   0xa   :  { %p743_p4 = pnand %p742_p3, %p736_p0 }
   0xc   :  { %746 = shalt.err (!%p743_p4)
}
   0xd   :  { %s857_s14 = smov 64   ;;  %s858_s15 = smov 4  }
   0xe   :  { %41 = dma.hbm_to_vmem [thread:$0]  %s998_s1, 256, %s36_s10, [#allocation6], %s857_s14, %s857_s14, %s858_s15  }
   0xf   :  { %s755_s18 = scalar_lea.vmem %s64_s12, 1024  ;;  %p760_p6 = scmp.lt.s32.totalorder %s64_s12, %s64_s12 }
  0x10   :  { %p756_p5 = scmp.ne.s32.totalorder %s64_s12, %s755_s18  ;;  %p761_p7 = scmp.lt.s32.totalorder %s755_s18, %s755_s18 }
  0x12   :  { %p762_p8 = por %p761_p7, %p760_p6 }
  0x14   :  { %p763_p9 = pnand %p762_p8, %p756_p5 }
  0x16   :  { %766 = shalt.err (!%p763_p9)
}
  0x17   :  { %69 = dma.hbm_to_vmem [thread:$0]  %s1002_s5, 1024, %s64_s12, [#allocation9], %s857_s14, %s857_s14, %s858_s15  }
  0x18   :  { %s859_s21 = smov [#allocation2]   ;;  %s860_s23 = smov [#allocation7]  }
  0x19   :  { %s23_s22 = sshll.u32 %s859_s21, 4  ;;  %s49_s24 = sshll.u32 %s860_s23, 4  ;;  %s24_s22 = int_to_ptr.vmem [resolvable:$true] %s23_s22  ;;  %s50_s24 = int_to_ptr.vmem [resolvable:$true] %s49_s24 }
  0x1a   :  { %s775_s1 = scalar_lea.vmem %s24_s22, 128  ;;  %p780_p11 = scmp.lt.s32.totalorder %s24_s22, %s24_s22 }
  0x1b   :  { %p776_p10 = scmp.ne.s32.totalorder %s24_s22, %s775_s1  ;;  %p781_p12 = scmp.lt.s32.totalorder %s775_s1, %s775_s1 }
  0x1d   :  { %p782_p13 = por %p781_p12, %p780_p11 }
  0x1f   :  { %p783_p0 = pnand %p782_p13, %p776_p10 }
  0x21   :  { %786 = shalt.err (!%p783_p0)
}
  0x22   :  { %29 = dma.hbm_to_vmem [thread:$0]  %s997_s0, 128, %s24_s22, [#allocation3], %s857_s14, %s857_s14, %s858_s15  }
  0x23   :  { %s795_s5 = scalar_lea.vmem %s50_s24, 1024  ;;  %p800_p2 = scmp.lt.s32.totalorder %s50_s24, %s50_s24 }
  0x24   :  { %p796_p1 = scmp.ne.s32.totalorder %s50_s24, %s795_s5  ;;  %p801_p3 = scmp.lt.s32.totalorder %s795_s5, %s795_s5 }
  0x26   :  { %p802_p4 = por %p801_p3, %p800_p2 }
  0x28   :  { %p803_p5 = pnand %p802_p4, %p796_p1 }
  0x2a   :  { %806 = shalt.err (!%p803_p5)
}
  0x2b   :  { %55 = dma.hbm_to_vmem [thread:$0]  %s1000_s3, 1024, %s50_s24, [#allocation6], %s857_s14, %s857_s14, %s858_s15  }
  0x2c   :  { %s861_s29 = smov [#allocation10]  }
  0x2d   :  { %s77_s30 = sshll.u32 %s861_s29, 4  ;;  %s78_s30 = int_to_ptr.vmem [resolvable:$true] %s77_s30 }
  0x2e   :  { %s815_s10 = scalar_lea.vmem %s78_s30, 1024  ;;  %p820_p7 = scmp.lt.s32.totalorder %s78_s30, %s78_s30 }
  0x2f   :  { %p816_p6 = scmp.ne.s32.totalorder %s78_s30, %s815_s10  ;;  %p821_p8 = scmp.lt.s32.totalorder %s815_s10, %s815_s10 }
  0x31   :  { %p822_p9 = por %p821_p8, %p820_p7 }
  0x33   :  { %p823_p10 = pnand %p822_p9, %p816_p6 }
  0x35   :  { %826 = shalt.err (!%p823_p10)
}
  0x36   :  { %83 = dma.hbm_to_vmem [thread:$0]  %s1004_s7, 1024, %s78_s30, [#allocation9], %s857_s14, %s857_s14, %s858_s15  }
  0x37   :  { %847 = dma.done.wait [#allocation3], 128  }
  0x38   :  { %848 = vsyncadd [#allocation3], 4294967168 }
  0x39   :  { %849 = dma.done.wait [#allocation6], 1280  }
  0x3a   :  { %850 = vsyncadd [#allocation6], 4294966016 }
  0x3b   :  { %851 = dma.done.wait [#allocation9], 2048  }
  0x3c   :  { %852 = vsyncadd [#allocation9], 4294965248  ;;  %v862_v0 = vmov 0.0   ;;  %vm863_vm0 = vmmov 0   ;;  %v700_v1 = vld [vmem:[#allocation5 + $0x8] sm:$0xff]   ;;  %v701_v2 = vld [vmem:[#allocation5] sm:$0xff]  }
  0x3d   :  { %622 = vmatprep.subr.bf16.mxu0 %v862_v0  ;;  %626 = vmatprep.mubr.msk.bf16.mxu0 %vm863_vm0, %v862_v0  ;;  %v703_v3 = vld [vmem:[#allocation7 + $0x38] sm:$0xff]   ;;  %v702_v4 = vld [vmem:[#allocation2] sm:$0xff]   ;;  %v704_v5 = vld [vmem:[#allocation7 + $0x30] sm:$0xff]   ;;  %vm132_vm1 = vcmask 261120   ;;  %s864_s18 = smov [#allocation11]  }
  0x3e   :  { %630 = vmatprep.subr.bf16.mxu1 %v862_v0  ;;  %646 = vmatprep.mubr.msk.bf16.mxu1 %vm863_vm0, %v862_v0  ;;  %v705_v6 = vld [vmem:[#allocation7 + $0x28] sm:$0xff]   ;;  %v706_v7 = vld [vmem:[#allocation7 + $0x20] sm:$0xff]   ;;  %v707_v8 = vld [vmem:[#allocation7 + $0x18] sm:$0xff]   ;;  %s537_s19 = sshll.u32 %s864_s18, 4  ;;  %s538_s19 = int_to_ptr.vmem [resolvable:$true] %s537_s19 }
  0x3f   :  { %623 = vmatpush3.bf16.msra.mxu0 %v700_v1  ;;  %631 = vmatpush3.bf16.msra.mxu1 %v703_v3  ;;  %v708_v9 = vld [vmem:[#allocation7 + $0x10] sm:$0xff]   ;;  %v709_v10 = vld [vmem:[#allocation7 + $0x8] sm:$0xff]   ;;  %v710_v11 = vld [vmem:[#allocation7] sm:$0xff]   ;;  %p832_p12 = scmp.lt.s32.totalorder %s538_s19, %s538_s19 }
  0x40   :  { %624 = vmatprep.subr.bf16.mxu0 %v862_v0  ;;  %632 = vmatprep.subr.bf16.mxu1 %v862_v0  ;;  %v711_v12 = vld [vmem:[#allocation8 + $0x38] sm:$0xff]   ;;  %v712_v13 = vld [vmem:[#allocation8 + $0x30] sm:$0xff]   ;;  %v713_v14 = vld [vmem:[#allocation8 + $0x28] sm:$0xff]  }
  0x41   :  { %v714_v15 = vld [vmem:[#allocation8 + $0x20] sm:$0xff]   ;;  %v715_v16 = vld [vmem:[#allocation8 + $0x18] sm:$0xff]   ;;  %v551_v17 = vld [vmem:[%s999_s2] ss:$0 sm:$0xff] }
  0x42   :  { %v716_v27 = vld [vmem:[#allocation8 + $0x10] sm:$0xff]   ;;  %v717_v28 = vld [vmem:[#allocation8 + $0x8] sm:$0xff]   ;;  %v718_v29 = vld [vmem:[#allocation8] sm:$0xff]  }
  0x43   :  { %625 = vmatpush3.bf16.msra.mxu0 %v701_v2  ;;  %633 = vmatpush3.bf16.msra.mxu1 %v704_v5  ;;  %v719_v30 = vld [vmem:[#allocation10 + $0x38] sm:$0xff]   ;;  %v720_v31 = vld [vmem:[#allocation10 + $0x30] sm:$0xff]   ;;  %v721_v32 = vld [vmem:[#allocation10 + $0x28] sm:$0xff]  }
  0x44   :  { %650 = vmatprep.subr.bf16.mxu0 %v862_v0  ;;  %634 = vmatprep.subr.bf16.mxu1 %v862_v0  ;;  %v722_v33 = vld [vmem:[#allocation10 + $0x20] sm:$0xff]   ;;  %v723_v34 = vld [vmem:[#allocation10 + $0x18] sm:$0xff]   ;;  %v556_v35 = vld [vmem:[%s1001_s4] ss:$0 sm:$0xff] }
  0x45   :  { %v724_v45 = vld [vmem:[#allocation10 + $0x10] sm:$0xff]   ;;  %v725_v46 = vld [vmem:[#allocation10 + $0x8] sm:$0xff]   ;;  %v726_v47 = vld [vmem:[#allocation10] sm:$0xff]  }
  0x46   :  { %627 = vmatmul.mubr.msk.bf16.vlgmr.msra.gmra.mxu0 %vm132_vm1, %v702_v4  ;;  %v565_v48 = vld [vmem:[%s1003_s6] ss:$0 sm:$0xff]  ;;  %s827_s6 = scalar_lea.vmem %s538_s19, 128 }
  0x47   :  { %666 = vmatprep.mubr.msk.bf16.mxu0 %vm863_vm0, %v862_v0  ;;  %635 = vmatpush3.bf16.msra.mxu1 %v705_v6  ;;  %v574_v59 = vld [vmem:[%s1005_s8] ss:$0 sm:$0xff]  ;;  %p828_p11 = scmp.ne.s32.totalorder %s538_s19, %s827_s6  ;;  %p833_p13 = scmp.lt.s32.totalorder %s827_s6, %s827_s6 }
  0x48   :  { %636 = vmatprep.subr.bf16.mxu1 %v862_v0  ;;  %651 = vmatpush3.bf16.msra.mxu0 %v711_v12 }
  0x49   :  { %652 = vmatprep.subr.bf16.mxu0 %v862_v0  ;;  %p834_p0 = por %p833_p13, %p832_p12 }
  0x4b   :  { %637 = vmatpush3.bf16.msra.mxu1 %v706_v7  ;;  %p835_p1 = pnand %p834_p0, %p828_p11 }
  0x4c   :  { %638 = vmatprep.subr.bf16.mxu1 %v862_v0  ;;  %653 = vmatpush3.bf16.msra.mxu0 %v712_v13 }
  0x4d   :  { %654 = vmatprep.subr.bf16.mxu0 %v862_v0 }
  0x4f   :  { %639 = vmatpush3.bf16.msra.mxu1 %v707_v8 }
  0x50   :  { %640 = vmatprep.subr.bf16.mxu1 %v862_v0  ;;  %655 = vmatpush3.bf16.msra.mxu0 %v713_v14 }
  0x51   :  { %656 = vmatprep.subr.bf16.mxu0 %v862_v0 }
  0x53   :  { %641 = vmatpush3.bf16.msra.mxu1 %v708_v9 }
  0x54   :  { %642 = vmatprep.subr.bf16.mxu1 %v862_v0  ;;  %657 = vmatpush3.bf16.msra.mxu0 %v714_v15 }
  0x55   :  { %658 = vmatprep.subr.bf16.mxu0 %v862_v0 }
  0x57   :  { %643 = vmatpush3.bf16.msra.mxu1 %v709_v10 }
  0x58   :  { %644 = vmatprep.subr.bf16.mxu1 %v862_v0  ;;  %659 = vmatpush3.bf16.msra.mxu0 %v715_v16 }
  0x59   :  { %660 = vmatprep.subr.bf16.mxu0 %v862_v0 }
  0x5b   :  { %645 = vmatpush3.bf16.msra.mxu1 %v710_v11 }
  0x5c   :  { %670 = vmatprep.subr.bf16.mxu1 %v862_v0  ;;  %661 = vmatpush3.bf16.msra.mxu0 %v716_v27 }
  0x5d   :  { %662 = vmatprep.subr.bf16.mxu0 %v862_v0 }
  0x60   :  { %663 = vmatpush3.bf16.msra.mxu0 %v717_v28 }
  0x61   :  { %664 = vmatprep.subr.bf16.mxu0 %v862_v0 }
  0x64   :  { %665 = vmatpush3.bf16.msra.mxu0 %v718_v29 }
 0x106   :  { %v170_v18 = vpop.f32.mrf.mxu0 }
 0x107   :  { %v171_v20 = vadd.f32 %v551_v17, %v170_v18 }
 0x108   :  { %v628_v19 = vpop.f32.mrf.mxu0 }
 0x109   :  { %v177_v24 = vmax.f32 %v171_v20, 0.0 }
 0x10a   :  { %v173_v21 = vpop.f32.mrf.mxu0 }
 0x10b   :  { %v174_v22 = vadd.f32 %v551_v17, %v173_v21 }
 0x10c   :  { %v629_v23 = vpop.f32.mrf.mxu0 }
 0x10d   :  { %v178_v25 = vmax.f32 %v174_v22, 0.0 }
 0x10f   :  { %v179_v26 = vpack.c.bf16 %v178_v25, %v177_v24 }
 0x111   :  { %647 = vmatmul.mubr.bf16.vlgmr.msra.gmra.mxu1 %v179_v26 }
 0x112   :  { %686 = vmatprep.mubr.msk.bf16.mxu1 %vm863_vm0, %v862_v0  ;;  %671 = vmatpush3.bf16.msra.mxu1 %v719_v30 }
 0x113   :  { %672 = vmatprep.subr.bf16.mxu1 %v862_v0 }
 0x116   :  { %673 = vmatpush3.bf16.msra.mxu1 %v720_v31 }
 0x117   :  { %674 = vmatprep.subr.bf16.mxu1 %v862_v0 }
 0x11a   :  { %675 = vmatpush3.bf16.msra.mxu1 %v721_v32 }
 0x11b   :  { %676 = vmatprep.subr.bf16.mxu1 %v862_v0 }
 0x11e   :  { %677 = vmatpush3.bf16.msra.mxu1 %v722_v33 }
 0x11f   :  { %678 = vmatprep.subr.bf16.mxu1 %v862_v0 }
 0x122   :  { %679 = vmatpush3.bf16.msra.mxu1 %v723_v34 }
 0x123   :  { %680 = vmatprep.subr.bf16.mxu1 %v862_v0 }
 0x126   :  { %681 = vmatpush3.bf16.msra.mxu1 %v724_v45 }
 0x127   :  { %682 = vmatprep.subr.bf16.mxu1 %v862_v0 }
 0x12a   :  { %683 = vmatpush3.bf16.msra.mxu1 %v725_v46 }
 0x12b   :  { %684 = vmatprep.subr.bf16.mxu1 %v862_v0 }
 0x12e   :  { %685 = vmatpush3.bf16.msra.mxu1 %v726_v47 }
 0x1d1   :  { %v285_v36 = vpop.f32.mrf.mxu1 }
 0x1d2   :  { %v286_v38 = vadd.f32 %v556_v35, %v285_v36 }
 0x1d3   :  { %v648_v37 = vpop.f32.mrf.mxu1 }
 0x1d4   :  { %v292_v42 = vmax.f32 %v286_v38, 0.0 }
 0x1d5   :  { %v288_v39 = vpop.f32.mrf.mxu1 }
 0x1d6   :  { %v289_v40 = vadd.f32 %v556_v35, %v288_v39 }
 0x1d7   :  { %v649_v41 = vpop.f32.mrf.mxu1 }
 0x1d8   :  { %v293_v43 = vmax.f32 %v289_v40, 0.0 }
 0x1da   :  { %v294_v44 = vpack.c.bf16 %v293_v43, %v292_v42 }
 0x1dc   :  { %667 = vmatmul.mubr.bf16.vlgmr.msra.gmra.mxu0 %v294_v44 }
 0x29c   :  { %v400_v49 = vpop.f32.mrf.mxu0 }
 0x29d   :  { %v401_v51 = vadd.f32 %v565_v48, %v400_v49 }
 0x29e   :  { %v668_v50 = vpop.f32.mrf.mxu0 }
 0x29f   :  { %v407_v55 = vmax.f32 %v401_v51, 0.0 }
 0x2a0   :  { %v403_v52 = vpop.f32.mrf.mxu0 }
 0x2a1   :  { %v404_v53 = vadd.f32 %v565_v48, %v403_v52 }
 0x2a2   :  { %v669_v54 = vpop.f32.mrf.mxu0 }
 0x2a3   :  { %v408_v56 = vmax.f32 %v404_v53, 0.0 }
 0x2a5   :  { %v409_v57 = vpack.c.bf16 %v408_v56, %v407_v55 }
 0x2a7   :  { %687 = vmatmul.mubr.bf16.vlgmr.msra.gmra.mxu1 %v409_v57 }
 0x367   :  { %v515_v58 = vpop.f32.mrf.mxu1 }
 0x368   :  { %v516_v62 = vadd.f32 %v574_v59, %v515_v58 }
 0x369   :  { %v688_v60 = vpop.f32.mrf.mxu1 }
 0x36b   :  { %v518_v61 = vpop.f32.mrf.mxu1 }
 0x36c   :  { %v519_v63 = vadd.f32 %v574_v59, %v518_v61 }
 0x36d   :  { %v689_v0 = vpop.f32.mrf.mxu1 }
 0x36e   :  { %v590_v1 = vpack.c.bf16 %v519_v63, %v516_v62 }
 0x370   :  { %591 = vst [vmem:[#allocation11] sm:$0xff] %v590_v1  }
 0x371   :  { %838 = shalt.err (!%p835_p1)
}
 0x372   :  { %543 = dma.vmem_to_hbm [thread:$0]  %s538_s19, 128, %s1006_s9, [#allocation4], %s857_s14, %s857_s14, %s858_s15  }
 0x373   :  { %853 = dma.done.wait [#allocation4], 128  }
 0x374   :  { %854 = vsyncadd [#allocation4], 4294967168 }
 0x375   :  { %547 = vsyncpa [#allocation3], 1 }
 0x376   :  { %548 = vsyncpa [#allocation6], 1 }
 0x377   :  { %549 = vsyncpa [#allocation9], 1 }
 0x378   :  { %550 = vsyncpa [#allocation4], 1 }

</bundles_post_ra>
